<compile_context>
chip_gen: v6e
topology: v6e:2x2x1
jax: 0.10.0
libtpu: 0.0.40
codegen_flags: <defaults>
</compile_context>

<pallas_src>
import functools

import jax
import jax.numpy as jnp
import numpy as np
from jax.experimental import pallas as pl
from jax.experimental.pallas import tpu as pltpu

_LANE = 128
_NEG_LOG_1E4 = 9.210340371976184  # -log(1e-4); from torch.clamp(one_hot, min=1e-4)


def _sce_kernel(w_ref, x_ref, t_ref, o_ref, *, num_classes, block_rows,
                tiles_inner, tail_start, any_tail, num_valid, ignore_index,
                has_weights):
    C = num_classes
    TR = block_rows
    tj = pl.program_id(2)
    ti = pl.program_id(1) * tiles_inner + tj   # logical (unclamped) row-tile index

    @pl.when(tj == 0)
    def _():
        o_ref[...] = jnp.zeros_like(o_ref)

    x = x_ref[0].astype(jnp.float32)     # (C, TR, 128) logits (native dtype DMA, f32 in VMEM)
    tgt = t_ref[0].astype(jnp.int32)     # (TR, 128) labels

    def accumulate(pad_valid):
        # Numerically-stable log-softmax pieces.  Class reductions stay elementwise (VPU);
        # transcendentals (C exps + 1 log + 1 recip per pixel) go to the EUP slot.
        m = jnp.max(x, axis=0)                      # (TR, 128)
        e = jnp.exp(x - m[None])                    # (C, TR, 128)
        s = jnp.sum(e, axis=0)                      # (TR, 128)
        lse = jnp.log(s)
        inv_s = pl.reciprocal(s, approx=True)       # EUP vrcp; ~2^-12 rel err (RCE term only)

        zeros = jnp.zeros((TR, _LANE), jnp.float32)
        x_t = zeros          # logit at target class
        p_t = zeros          # softmax prob at target class (lower-clamped)
        p_sum = zeros        # sum_c max(p_c, 1e-7)
        w_t = zeros          # class weight at target class (weighted path only)
        for c in range(C):   # static, small class loop: VPU selects only
            hit = tgt == c
            p_c = jnp.maximum(e[c] * inv_s, 1e-7)   # p_c <= 1 mathematically; upper clamp dropped
            p_sum = p_sum + p_c
            x_t = jnp.where(hit, x[c], x_t)
            p_t = jnp.where(hit, p_c, p_t)
            if has_weights:
                w_t = jnp.where(hit, w_ref[c], w_t)

        ce_valid = tgt != ignore_index
        if pad_valid is not None:
            ce_valid = jnp.logical_and(ce_valid, pad_valid)

        nll = (m + lse) - x_t                       # -log_softmax(x)[target]
        if has_weights:
            ce_num = jnp.where(ce_valid, w_t * nll, 0.0)
            ce_den = jnp.where(ce_valid, w_t, 0.0)
        else:                                       # uniform-weight specialization
            ce_num = jnp.where(ce_valid, nll, 0.0)
            ce_den = jnp.where(ce_valid, 1.0, 0.0)

        # rce = -sum_c p_c * log(clamp(one_hot, 1e-4, 1)) = -log(1e-4) * (sum_c p_c - p_target)
        rce = _NEG_LOG_1E4 * (p_sum - p_t)
        if pad_valid is not None:
            rce = jnp.where(pad_valid, rce, 0.0)

        def fold(v):   # (TR,128) -> (8,128): sublane-group partial sums, stays on the VPU
            return jnp.sum(v.reshape(TR // 8, 8, _LANE), axis=0)

        # Single fused read-modify-write of the resident (3,8,128) accumulator block.
        o_ref[0, 0] = o_ref[0, 0] + jnp.stack(
            [fold(ce_num), fold(ce_den), fold(rce)], axis=0)

    def tail_mask():
        row_i = jax.lax.broadcasted_iota(jnp.int32, (TR, _LANE), 0)
        lane_i = jax.lax.broadcasted_iota(jnp.int32, (TR, _LANE), 1)
        flat = (ti * TR + row_i) * _LANE + lane_i
        return flat < num_valid

    if not any_tail:
        accumulate(None)                       # no ragged data anywhere: mask-free fast path
    elif tail_start <= 0:
        accumulate(tail_mask())                # every tile may contain invalid data
    else:
        in_tail = ti >= tail_start

        @pl.when(jnp.logical_not(in_tail))
        def _():
            accumulate(None)                   # interior tiles: no padding math at all

        @pl.when(in_tail)
        def _():
            accumulate(tail_mask())            # only the ragged / overhang tiles pay for masks


def symmetric_cross_entropy_2d(logits, targets, *, alpha=0.5, beta=0.6,
                               weights=None, ignore_index=255, block_rows=None):
    """logits: (N, C, H, W); targets: (N, H, W) int. Returns scalar f32 loss."""
    N, C, H, W = logits.shape
    HW = H * W

    if logits.dtype == jnp.float64:
        logits = logits.astype(jnp.float32)
    x_dtype = logits.dtype

    has_weights = weights is not None
    w = (jnp.asarray(weights, jnp.float32) if has_weights
         else jnp.ones((C,), jnp.float32))

    use_u8 = (0 <= ignore_index <= 255) and (C <= 255)
    t_dtype = jnp.uint8 if use_u8 else jnp.int32

    rows = pl.cdiv(HW, _LANE)        # number of 128-lane rows of real data
    hw_pad = rows * _LANE

    # Free reshape of the contiguous spatial axis; a copy only happens for the HW%128 tail.
    x = logits.reshape(N, C, HW)
    t = targets.reshape(N, HW).astype(t_dtype)
    if hw_pad != HW:
        x = jnp.pad(x, ((0, 0), (0, 0), (0, hw_pad - HW)))
        t = jnp.pad(t, ((0, 0), (0, hw_pad - HW)))
    x = x.reshape(N, C, rows, _LANE)
    t = t.reshape(N, rows, _LANE)

    # --- row-tile size: big enough to amortize per-step overhead, budgeted for v7x VMEM ---
    if block_rows is None:
        x_b = jnp.dtype(x_dtype).itemsize
        t_b = jnp.dtype(t_dtype).itemsize
        per_row = _LANE * (2 * (C * x_b + t_b)      # double-buffered input DMA
                           + 4 * (2 * C + 12))      # in-kernel f32 temporaries (rough)
        block_rows = (30 * 1024 * 1024) // per_row  # plan ~30 MiB << 48 MiB limit
    br = min(int(block_rows), 2048, ((rows + 31) // 32) * 32)
    br = max(32, (br // 32) * 32)                   # mult of 32: covers f32/bf16/uint8 tiling

    T_real = pl.cdiv(rows, br)
    # Optional 2-way parallel split of the row tiles so both v7x TensorCores have work
    # even when the batch axis alone cannot be split evenly.
    T_outer = 2 if (N % 2 == 1 and T_real >= 2) else 1
    T_inner = pl.cdiv(T_real, T_outer)
    T_total = T_outer * T_inner

    last_ragged = (T_real * br != rows) or (hw_pad != HW)
    tail_start = (T_real - 1) if last_ragged else T_real   # first tile needing the pad mask
    any_tail = tail_start < T_total

    def row_block(to, tj):
        ti = to * T_inner + tj
        if T_total > T_real:
            # Overhang tiles re-read the last real block (no OOB DMA); the kernel's
            # flat-index mask (based on the unclamped ti) zeroes their contribution.
            ti = jnp.minimum(ti, T_real - 1)
        return ti

    kernel = functools.partial(
        _sce_kernel, num_classes=C, block_rows=br, tiles_inner=T_inner,
        tail_start=tail_start, any_tail=any_tail, num_valid=HW,
        ignore_index=ignore_index, has_weights=has_weights)

    partials = pl.pallas_call(
        kernel,
        out_shape=jax.ShapeDtypeStruct((N, T_outer, 3, 8, _LANE), jnp.float32),
        grid_spec=pltpu.PrefetchScalarGridSpec(
            num_scalar_prefetch=1,   # class weights land in SMEM
            grid=(N, T_outer, T_inner),
            in_specs=[
                pl.BlockSpec((1, C, br, _LANE),
                             lambda n, to, tj, w_s: (n, 0, row_block(to, tj), 0)),
                pl.BlockSpec((1, br, _LANE),
                             lambda n, to, tj, w_s: (n, row_block(to, tj), 0)),
            ],
            out_specs=pl.BlockSpec((1, 1, 3, 8, _LANE),
                                   lambda n, to, tj, w_s: (n, to, 0, 0, 0)),
        ),
        compiler_params=pltpu.CompilerParams(
            dimension_semantics=("parallel", "parallel", "arbitrary"),
            vmem_limit_bytes=48 * 1024 * 1024),        # fits v7x's 64 MiB, fine on v5e/v6e
    )(w, x, t)

    ce_num = jnp.sum(partials[:, :, 0])
    ce_den = jnp.sum(partials[:, :, 1])
    rce_sum = jnp.sum(partials[:, :, 2])
    ce = ce_num / ce_den                               # weighted mean (ignore_index excluded)
    rce_mean = rce_sum / jnp.float32(N * HW)           # plain mean over all pixels
    return alpha * ce + beta * rce_mean


if __name__ == "__main__":
    key = jax.random.PRNGKey(0)
    N, C, H, W = 2, 4, 16, 16
    k1, k2 = jax.random.split(key)
    logits = jax.random.normal(k1, (N, C, H, W), jnp.float32)
    targets = jax.random.randint(k2, (N, H, W), 0, C, dtype=jnp.int32)
    targets = targets.at[0, 0, :3].set(255)            # exercise ignore_index pixels
    weights = jnp.array([1.0, 0.5, 2.0, 1.5], jnp.float32)
    alpha, beta, ignore_index = 0.5, 0.6, 255

    out = jax.block_until_ready(
        symmetric_cross_entropy_2d(logits, targets, alpha=alpha, beta=beta,
                                   weights=weights, ignore_index=ignore_index))

    # Pure-JAX reference mirroring the PyTorch forward.
    logp = jax.nn.log_softmax(logits, axis=1)
    p = jnp.clip(jax.nn.softmax(logits, axis=1), 1e-7, 1.0)
    nll = -jnp.take_along_axis(logp, jnp.clip(targets, 0, C - 1)[:, None], axis=1)[:, 0]
    w_t = weights[jnp.clip(targets, 0, C - 1)]
    valid = targets != ignore_index
    ce_ref = (jnp.sum(jnp.where(valid, w_t * nll, 0.0))
              / jnp.sum(jnp.where(valid, w_t, 0.0)))
    label = jnp.clip(jax.nn.one_hot(targets, C, axis=1), 1e-4, 1.0)
    rce_ref = -jnp.sum(p * jnp.log(label), axis=1)
    ref = alpha * ce_ref + beta * jnp.mean(rce_ref)

    # TODO(synk): PyTorch's F.one_hot raises on ignore_index-labeled pixels; here such pixels
    # simply match no class in the RCE term (CE excludes them exactly as nn.CrossEntropyLoss).
    # Tolerance is 2e-3 because the RCE softmax uses the EUP approximate reciprocal (~2^-12 rel).
    assert np.allclose(np.asarray(out), np.asarray(ref), rtol=2e-3, atol=2e-3), (out, ref)
    print("KERNEL_OK")
</pallas_src>

<mosaic_0001>
module attributes {stable_mosaic.version = 11 : i64} {
  func.func @_sce_kernel(%arg0: i32, %arg1: i32, %arg2: i32, %arg3: memref<4xf32, #tpu.memory_space<smem>>, %arg4: memref<1x4x32x128xf32, #tpu.memory_space<vmem>>, %arg5: memref<1x32x128xi8, #tpu.memory_space<vmem>>, %arg6: memref<1x1x3x8x128xf32, #tpu.memory_space<vmem>>) attributes {dimension_semantics = [#tpu.dimension_semantics<parallel>, #tpu.dimension_semantics<parallel>, #tpu.dimension_semantics<arbitrary>], iteration_bounds = array<i64: 2, 1, 1>, scalar_prefetch = 1 : i64, scratch_operands = 0 : i64, tpu.core_type = #tpu.core_type<tc>, window_params = [{transform_indices = @transform_0, window_bounds = array<i64: 1, 4, 32, 128>}, {transform_indices = @transform_1, window_bounds = array<i64: 1, 32, 128>}, {transform_indices = @transform_2, window_bounds = array<i64: 1, 1, 3, 8, 128>}]} {
    %c1_i32 = arith.constant 1 : i32
    %0 = arith.muli %arg1, %c1_i32 : i32
    %1 = arith.addi %0, %arg2 : i32
    %c0_i32 = arith.constant 0 : i32
    %2 = arith.cmpi eq, %arg2, %c0_i32 : i32
    %3 = arith.extui %2 : i1 to i32
    %c0_i32_0 = arith.constant 0 : i32
    %4 = arith.cmpi ne, %3, %c0_i32_0 : i32
    scf.if %4 {
      %cst_33 = arith.constant 0.000000e+00 : f32
      %120 = vector.broadcast %cst_33 : f32 to vector<1x1x3x8x128xf32>
      %c0_34 = arith.constant 0 : index
      %c0_35 = arith.constant 0 : index
      %c0_36 = arith.constant 0 : index
      %c0_37 = arith.constant 0 : index
      %c0_38 = arith.constant 0 : index
      %121 = vector.load %arg6[%c0_34, %c0_35, %c0_36, %c0_37, %c0_38] : memref<1x1x3x8x128xf32, #tpu.memory_space<vmem>>, vector<1x1x3x8x128xf32>
      tpu.vector_store %arg6[%c0_34, %c0_35, %c0_36, %c0_37, %c0_38], %120 {strides = array<i32>} : memref<1x1x3x8x128xf32, #tpu.memory_space<vmem>>, vector<1x1x3x8x128xf32>,
    } else {
    }
    %c0 = arith.constant 0 : index
    %c0_1 = arith.constant 0 : index
    %c0_2 = arith.constant 0 : index
    %c0_3 = arith.constant 0 : index
    %5 = vector.load %arg4[%c0, %c0_1, %c0_2, %c0_3] : memref<1x4x32x128xf32, #tpu.memory_space<vmem>>, vector<1x4x32x128xf32>
    %6 = vector.shape_cast %5 : vector<1x4x32x128xf32> to vector<4x32x128xf32>
    %c0_4 = arith.constant 0 : index
    %c0_5 = arith.constant 0 : index
    %c0_6 = arith.constant 0 : index
    %7 = vector.load %arg5[%c0_4, %c0_5, %c0_6] : memref<1x32x128xi8, #tpu.memory_space<vmem>>, vector<1x32x128xi8>
    %8 = vector.shape_cast %7 : vector<1x32x128xi8> to vector<32x128xi8>
    %9 = arith.extui %8 : vector<32x128xi8> to vector<32x128xi32>
    %10 = tpu.iota {dimensions = array<i32: 0>} : vector<32x128xi32>
    %11 = tpu.iota {dimensions = array<i32: 1>} : vector<32x128xi32>
    %c32_i32 = arith.constant 32 : i32
    %12 = arith.muli %1, %c32_i32 : i32
    %13 = vector.broadcast %12 : i32 to vector<32x128xi32>
    %14 = arith.addi %13, %10 : vector<32x128xi32>
    %c128_i32 = arith.constant 128 : i32
    %15 = vector.broadcast %c128_i32 : i32 to vector<32x128xi32>
    %16 = arith.muli %14, %15 : vector<32x128xi32>
    %17 = arith.addi %16, %11 : vector<32x128xi32>
    %c256_i32 = arith.constant 256 : i32
    %18 = vector.broadcast %c256_i32 : i32 to vector<32x128xi32>
    %19 = arith.cmpi slt, %17, %18 : vector<32x128xi32>
    %cst = arith.constant dense<0xFF800000> : vector<32x128xf32>
    %20 = vector.multi_reduction <maximumf>, %6, %cst [0] : vector<4x32x128xf32> to vector<32x128xf32>
    %21 = vector.shape_cast %20 : vector<32x128xf32> to vector<1x32x128xf32>
    %22 = vector.broadcast %21 : vector<1x32x128xf32> to vector<4x32x128xf32>
    %23 = arith.subf %6, %22 : vector<4x32x128xf32>
    %24 = math.exp %23 : vector<4x32x128xf32>
    %cst_7 = arith.constant dense<0.000000e+00> : vector<32x128xf32>
    %25 = vector.multi_reduction <add>, %24, %cst_7 [0] : vector<4x32x128xf32> to vector<32x128xf32>
    %26 = math.log %25 : vector<32x128xf32>
    %27 = tpu.reciprocal %25 {approx = true} : vector<32x128xf32> -> vector<32x128xf32>
    %cst_8 = arith.constant 0.000000e+00 : f32
    %28 = vector.broadcast %cst_8 : f32 to vector<32x128xf32>
    %c0_i32_9 = arith.constant 0 : i32
    %29 = vector.broadcast %c0_i32_9 : i32 to vector<32x128xi32>
    %30 = arith.cmpi eq, %9, %29 : vector<32x128xi32>
    %31 = vector.extract_strided_slice %24 {offsets = [0, 0, 0], sizes = [1, 32, 128], strides = [1, 1, 1]} : vector<4x32x128xf32> to vector<1x32x128xf32>
    %32 = vector.shape_cast %31 : vector<1x32x128xf32> to vector<32x128xf32>
    %33 = arith.mulf %32, %27 : vector<32x128xf32>
    %cst_10 = arith.constant 1.000000e-07 : f32
    %34 = vector.broadcast %cst_10 : f32 to vector<32x128xf32>
    %35 = arith.maximumf %33, %34 : vector<32x128xf32>
    %36 = arith.addf %28, %35 : vector<32x128xf32>
    %37 = vector.extract_strided_slice %6 {offsets = [0, 0, 0], sizes = [1, 32, 128], strides = [1, 1, 1]} : vector<4x32x128xf32> to vector<1x32x128xf32>
    %38 = vector.shape_cast %37 : vector<1x32x128xf32> to vector<32x128xf32>
    %39 = arith.select %30, %38, %28 : vector<32x128xi1>, vector<32x128xf32>
    %40 = arith.select %30, %35, %28 : vector<32x128xi1>, vector<32x128xf32>
    %c0_11 = arith.constant 0 : index
    %41 = memref.load %arg3[%c0_11] : memref<4xf32, #tpu.memory_space<smem>>
    %42 = vector.broadcast %41 : f32 to vector<32x128xf32>
    %43 = arith.select %30, %42, %28 : vector<32x128xi1>, vector<32x128xf32>
    %c1_i32_12 = arith.constant 1 : i32
    %44 = vector.broadcast %c1_i32_12 : i32 to vector<32x128xi32>
    %45 = arith.cmpi eq, %9, %44 : vector<32x128xi32>
    %46 = vector.extract_strided_slice %24 {offsets = [1, 0, 0], sizes = [1, 32, 128], strides = [1, 1, 1]} : vector<4x32x128xf32> to vector<1x32x128xf32>
    %47 = vector.shape_cast %46 : vector<1x32x128xf32> to vector<32x128xf32>
    %48 = arith.mulf %47, %27 : vector<32x128xf32>
    %cst_13 = arith.constant 1.000000e-07 : f32
    %49 = vector.broadcast %cst_13 : f32 to vector<32x128xf32>
    %50 = arith.maximumf %48, %49 : vector<32x128xf32>
    %51 = arith.addf %36, %50 : vector<32x128xf32>
    %52 = vector.extract_strided_slice %6 {offsets = [1, 0, 0], sizes = [1, 32, 128], strides = [1, 1, 1]} : vector<4x32x128xf32> to vector<1x32x128xf32>
    %53 = vector.shape_cast %52 : vector<1x32x128xf32> to vector<32x128xf32>
    %54 = arith.select %45, %53, %39 : vector<32x128xi1>, vector<32x128xf32>
    %55 = arith.select %45, %50, %40 : vector<32x128xi1>, vector<32x128xf32>
    %c1 = arith.constant 1 : index
    %56 = memref.load %arg3[%c1] : memref<4xf32, #tpu.memory_space<smem>>
    %57 = vector.broadcast %56 : f32 to vector<32x128xf32>
    %58 = arith.select %45, %57, %43 : vector<32x128xi1>, vector<32x128xf32>
    %c2_i32 = arith.constant 2 : i32
    %59 = vector.broadcast %c2_i32 : i32 to vector<32x128xi32>
    %60 = arith.cmpi eq, %9, %59 : vector<32x128xi32>
    %61 = vector.extract_strided_slice %24 {offsets = [2, 0, 0], sizes = [1, 32, 128], strides = [1, 1, 1]} : vector<4x32x128xf32> to vector<1x32x128xf32>
    %62 = vector.shape_cast %61 : vector<1x32x128xf32> to vector<32x128xf32>
    %63 = arith.mulf %62, %27 : vector<32x128xf32>
    %cst_14 = arith.constant 1.000000e-07 : f32
    %64 = vector.broadcast %cst_14 : f32 to vector<32x128xf32>
    %65 = arith.maximumf %63, %64 : vector<32x128xf32>
    %66 = arith.addf %51, %65 : vector<32x128xf32>
    %67 = vector.extract_strided_slice %6 {offsets = [2, 0, 0], sizes = [1, 32, 128], strides = [1, 1, 1]} : vector<4x32x128xf32> to vector<1x32x128xf32>
    %68 = vector.shape_cast %67 : vector<1x32x128xf32> to vector<32x128xf32>
    %69 = arith.select %60, %68, %54 : vector<32x128xi1>, vector<32x128xf32>
    %70 = arith.select %60, %65, %55 : vector<32x128xi1>, vector<32x128xf32>
    %c2 = arith.constant 2 : index
    %71 = memref.load %arg3[%c2] : memref<4xf32, #tpu.memory_space<smem>>
    %72 = vector.broadcast %71 : f32 to vector<32x128xf32>
    %73 = arith.select %60, %72, %58 : vector<32x128xi1>, vector<32x128xf32>
    %c3_i32 = arith.constant 3 : i32
    %74 = vector.broadcast %c3_i32 : i32 to vector<32x128xi32>
    %75 = arith.cmpi eq, %9, %74 : vector<32x128xi32>
    %76 = vector.extract_strided_slice %24 {offsets = [3, 0, 0], sizes = [1, 32, 128], strides = [1, 1, 1]} : vector<4x32x128xf32> to vector<1x32x128xf32>
    %77 = vector.shape_cast %76 : vector<1x32x128xf32> to vector<32x128xf32>
    %78 = arith.mulf %77, %27 : vector<32x128xf32>
    %cst_15 = arith.constant 1.000000e-07 : f32
    %79 = vector.broadcast %cst_15 : f32 to vector<32x128xf32>
    %80 = arith.maximumf %78, %79 : vector<32x128xf32>
    %81 = arith.addf %66, %80 : vector<32x128xf32>
    %82 = vector.extract_strided_slice %6 {offsets = [3, 0, 0], sizes = [1, 32, 128], strides = [1, 1, 1]} : vector<4x32x128xf32> to vector<1x32x128xf32>
    %83 = vector.shape_cast %82 : vector<1x32x128xf32> to vector<32x128xf32>
    %84 = arith.select %75, %83, %69 : vector<32x128xi1>, vector<32x128xf32>
    %85 = arith.select %75, %80, %70 : vector<32x128xi1>, vector<32x128xf32>
    %c3 = arith.constant 3 : index
    %86 = memref.load %arg3[%c3] : memref<4xf32, #tpu.memory_space<smem>>
    %87 = vector.broadcast %86 : f32 to vector<32x128xf32>
    %88 = arith.select %75, %87, %73 : vector<32x128xi1>, vector<32x128xf32>
    %c255_i32 = arith.constant 255 : i32
    %89 = vector.broadcast %c255_i32 : i32 to vector<32x128xi32>
    %90 = arith.cmpi ne, %9, %89 : vector<32x128xi32>
    %91 = arith.andi %90, %19 : vector<32x128xi1>
    %92 = arith.addf %20, %26 : vector<32x128xf32>
    %93 = arith.subf %92, %84 : vector<32x128xf32>
    %94 = arith.mulf %88, %93 : vector<32x128xf32>
    %cst_16 = arith.constant 0.000000e+00 : f32
    %95 = vector.broadcast %cst_16 : f32 to vector<32x128xf32>
    %96 = arith.select %91, %94, %95 : vector<32x128xi1>, vector<32x128xf32>
    %cst_17 = arith.constant 0.000000e+00 : f32
    %97 = vector.broadcast %cst_17 : f32 to vector<32x128xf32>
    %98 = arith.select %91, %88, %97 : vector<32x128xi1>, vector<32x128xf32>
    %99 = arith.subf %81, %85 : vector<32x128xf32>
    %cst_18 = arith.constant 9.21034049 : f32
    %100 = vector.broadcast %cst_18 : f32 to vector<32x128xf32>
    %101 = arith.mulf %100, %99 : vector<32x128xf32>
    %cst_19 = arith.constant 0.000000e+00 : f32
    %102 = vector.broadcast %cst_19 : f32 to vector<32x128xf32>
    %103 = arith.select %19, %101, %102 : vector<32x128xi1>, vector<32x128xf32>
    %c0_20 = arith.constant 0 : index
    %c0_21 = arith.constant 0 : index
    %c0_22 = arith.constant 0 : index
    %c0_23 = arith.constant 0 : index
    %c0_24 = arith.constant 0 : index
    %104 = vector.load %arg6[%c0_20, %c0_21, %c0_22, %c0_23, %c0_24] : memref<1x1x3x8x128xf32, #tpu.memory_space<vmem>>, vector<1x1x3x8x128xf32>
    %105 = vector.shape_cast %104 : vector<1x1x3x8x128xf32> to vector<3x8x128xf32>
    %106 = vector.shape_cast %96 : vector<32x128xf32> to vector<4x8x128xf32>
    %cst_25 = arith.constant dense<0.000000e+00> : vector<8x128xf32>
    %107 = vector.multi_reduction <add>, %106, %cst_25 [0] : vector<4x8x128xf32> to vector<8x128xf32>
    %108 = vector.shape_cast %98 : vector<32x128xf32> to vector<4x8x128xf32>
    %cst_26 = arith.constant dense<0.000000e+00> : vector<8x128xf32>
    %109 = vector.multi_reduction <add>, %108, %cst_26 [0] : vector<4x8x128xf32> to vector<8x128xf32>
    %110 = vector.shape_cast %103 : vector<32x128xf32> to vector<4x8x128xf32>
    %cst_27 = arith.constant dense<0.000000e+00> : vector<8x128xf32>
    %111 = vector.multi_reduction <add>, %110, %cst_27 [0] : vector<4x8x128xf32> to vector<8x128xf32>
    %112 = vector.shape_cast %107 : vector<8x128xf32> to vector<1x8x128xf32>
    %113 = vector.shape_cast %109 : vector<8x128xf32> to vector<1x8x128xf32>
    %114 = vector.shape_cast %111 : vector<8x128xf32> to vector<1x8x128xf32>
    %115 = tpu.concatenate %112, %113, %114 in 0 : vector<1x8x128xf32>, vector<1x8x128xf32>, vector<1x8x128xf32> -> vector<3x8x128xf32>
    %116 = arith.addf %105, %115 : vector<3x8x128xf32>
    %c0_28 = arith.constant 0 : index
    %c0_29 = arith.constant 0 : index
    %c0_30 = arith.constant 0 : index
    %c0_31 = arith.constant 0 : index
    %c0_32 = arith.constant 0 : index
    %117 = vector.load %arg6[%c0_28, %c0_29, %c0_30, %c0_31, %c0_32] : memref<1x1x3x8x128xf32, #tpu.memory_space<vmem>>, vector<1x1x3x8x128xf32>
    %118 = vector.shape_cast %117 : vector<1x1x3x8x128xf32> to vector<3x8x128xf32>
    %119 = vector.shape_cast %116 : vector<3x8x128xf32> to vector<1x1x3x8x128xf32>
    tpu.vector_store %arg6[%c0_28, %c0_29, %c0_30, %c0_31, %c0_32], %119 {strides = array<i32>} : memref<1x1x3x8x128xf32, #tpu.memory_space<vmem>>, vector<1x1x3x8x128xf32>,
    return
  }
  func.func @transform_0(%arg0: i32, %arg1: i32, %arg2: i32, %arg3: memref<4xf32, #tpu.memory_space<smem>>) -> (i32, i32, i32, i32) {
    %c1_i32 = arith.constant 1 : i32
    %0 = arith.muli %arg1, %c1_i32 : i32
    %1 = arith.addi %0, %arg2 : i32
    %c0_i32 = arith.constant 0 : i32
    %c0_i32_0 = arith.constant 0 : i32
    %c0_i32_1 = arith.constant 0 : i32
    return %arg0, %c0_i32, %1, %c0_i32_0 : i32, i32, i32, i32
  }
  func.func @transform_1(%arg0: i32, %arg1: i32, %arg2: i32, %arg3: memref<4xf32, #tpu.memory_space<smem>>) -> (i32, i32, i32) {
    %c1_i32 = arith.constant 1 : i32
    %0 = arith.muli %arg1, %c1_i32 : i32
    %1 = arith.addi %0, %arg2 : i32
    %c0_i32 = arith.constant 0 : i32
    %c0_i32_0 = arith.constant 0 : i32
    return %arg0, %1, %c0_i32 : i32, i32, i32
  }
  func.func @transform_2(%arg0: i32, %arg1: i32, %arg2: i32, %arg3: memref<4xf32, #tpu.memory_space<smem>>) -> (i32, i32, i32, i32, i32) {
    %c0_i32 = arith.constant 0 : i32
    %c0_i32_0 = arith.constant 0 : i32
    %c0_i32_1 = arith.constant 0 : i32
    %c0_i32_2 = arith.constant 0 : i32
    return %arg0, %arg1, %c0_i32, %c0_i32_0, %c0_i32_1 : i32, i32, i32, i32, i32
  }
}

</mosaic_0001>

<bundles_post_ra>
// kernel: tpu_custom_call.1
= control target key start
LH: loop header
LB: loop body
LE: loop exit
PB: predicated region body
PF: predicated region fallthrough
CT: control target
= control target key end

     0   :  { %s1240_s12 = smov [#allocation3]   ;;  %s2135_s0 = inlined_call_operand.hbm [shape: f32[4], index: 0, kind: input, shape index: {}]   ;;  %s2136_s1 = inlined_call_operand.hbm [shape: f32[2,4,2,128], index: 1, kind: input, shape index: {}]   ;;  %s2137_s2 = inlined_call_operand.vmem [shape: u8[2,2,128], index: 2, kind: input, shape index: {}]   ;;  %s2138_s3 = inlined_call_operand.hbm [shape: f32[2,1,3,8,128], index: 3, kind: output, shape index: {}]  }
   0x1   :  { %9 = dma.hbm_to_smem %s2135_s0, 16, %s1240_s12, [#allocation2] }
   0x2   :  { %1206 = dma.done.wait [#allocation2], 16 }
   0x3   :  { %1207 = vsyncadd [#allocation2], 4294967280 }
   0x4   :  { %11 = sfence }
   0x5   :  { %12 = vsyncpa [#allocation5], 0 }
   0x6   :  { %14 = vsyncpa [#allocation5 + $0x1], 0 }
   0x7   :  { %15 = vsyncpa [#allocation6], 0 }
   0x8   :  { %17 = vsyncpa [#allocation6 + $0x1], 0  ;;  %s1273_s15 = smov 0   ;;  %s1275_s16 = smov 0  }
   0x9   :  { %s1277_s17 = smov 0   ;;  %s1279_s18 = smov 0  }
   0xa   :  { %s1281_s19 = smov 0   ;;  %s1283_s20 = smov 0  }
   0xb LB: > { %s998_s0 = sadd.s32 4294967295, %s1238_s20   ;;  %s999_s21 = sadd.s32 4294967294, %s1238_s20   ;;  %s1238_s20 = sphi %s1283_s20, %s23_s20   ;;  %s1234_s19 = sphi %s1281_s19, %s2246_s19   ;;  %s1230_s18 = sphi %s1279_s18, %s2245_s18   ;;  %s1226_s17 = sphi %s1277_s17, %s2244_s17   ;;  %s1222_s16 = sphi %s1275_s16, %s2243_s16   ;;  %s1218_s15 = sphi %s1273_s15, %s2242_s15  }
   0xc   : > { %s42_s22 = sadd.s32 1, %s1234_s19  ;;  %s53_s23 = sadd.s32 1, %s1226_s17 }
   0xd   : > { %p44_p0 = scmp.ge.s32.totalorder %s42_s22, 2  ;;  %p60_p1 = scmp.ne.s32.totalorder %s1226_s17, %s1222_s16 }
   0xe   : > { %p61_p2 = scmp.eq.s32.totalorder %s1238_s20, 0  ;;  %p66_p3 = scmp.ne.s32.totalorder %s1222_s16, %s1218_s15 }
   0xf   : > { %s2248_s22 = smov (%p44_p0, %s42_s22), 0  ;;  %p67_p5 = scmp.eq.s32.totalorder %s998_s0, 0 }
  0x10   : > { %p62_p4 = por %p61_p2, %p60_p1  ;;  %s48_s24 = ssub.s32 %s1234_s19, %s2248_s22 }
  0x11   : > { %p122_p6 = scmp.eq.s32.totalorder %s998_s0, 1  ;;  %p51_p7 = scmp.eq.s32.totalorder %s48_s24, 0 }
  0x12   : > { %p1316_p8 = por %p67_p5, %p66_p3  ;;  %p128_p10 = scmp.eq.s32.totalorder %s999_s21, 1 }
  0x13   : > { %p1320_p9 = por %p122_p6, %p60_p1  ;;  %p1001_p12 = scmp.ge.s32.totalorder %s1238_s20, 2 }
  0x14   : > { %s1325_s27 = scalar_select %p51_p7, %s1226_s17, %s53_s23  }
  0x15   : > { %p1327_p11 = por %p128_p10, %p66_p3  ;;  %144 = sbr.rel (%p1001_p12) target bundleno = 44 (0x2c), region = 16 }
  0x1a   : > { %147 = sbr.rel (!%p62_p4) target bundleno = 44 (0x2c), region = 20 }
  0x1f   : > { %s148_s29 = sand.u32 1, %s1226_s17  }
  0x20   : > { %s1002_s30 = sshll.u32 %s148_s29, 7  ;;  %s149_s4 = scalar_lea.sflag [#allocation5], %s148_s29 }
  0x21   : > { %s152_s5 = scalar_lea.vmem [#allocation4], %s1002_s30 }
  0x22   : > { %159 = vsyncadd %s149_s4, 1920  ;;  %s1015_s6 = sshll.u32 %s1234_s19, 7  ;;  %s171_s7 = sld [smem:[#allocation0]]  }
  0x23   : > { %s164_s10 = scalar_lea.hbm %s2136_s1, %s1015_s6  ;;  %s179_s11 = sshll.u32 %s152_s5, 4  ;;  %s180_s11 = int_to_ptr.vmem [resolvable:$true] %s179_s11 }
  0x24   : > { %s1241_s12 = smov 32   ;;  %s1242_s13 = smov 512  }
  0x25   : > { %186 = sst [smem:[#allocation9]] %s1241_s12  ;;  %s1243_s14 = smov 1  }
  0x26   : > { %188 = sst [smem:[#allocation9 + $0x1]] %s1242_s13  ;;  %s1244_s23 = smov 2  }
  0x27   : > { %190 = sst [smem:[#allocation9 + $0x2]] %s1243_s14  ;;  %s1245_s24 = smov 131072  }
  0x28   : > { %s1005_s0 = sshll.u32 %s171_s7, 26  ;;  %192 = sst [smem:[#allocation9 + $0x3]] %s1241_s12 }
  0x29   : > { %s1006_s21 = sadd.s32 134217728, %s1005_s0  ;;  %194 = sst [smem:[#allocation9 + $0x4]] %s1241_s12 }
  0x2a   : > { %196 = sst [smem:[#allocation9 + $0x5]] %s1244_s23 }
  0x2b   : > { %198 = dma.general %s164_s10, 128, %s180_s11, %s149_s4, %s1245_s24, [#allocation9], %s1006_s21, 0  }
  0x2c PF: > { %p1007_p13 = scmp.ge.s32.totalorder %s1238_s20, 1  ;;  %p217_p0 = scmp.lt.s32.totalorder %s1238_s20, 3 }
  0x2e   : > { %p218_p1 = pnand %p1007_p13, %p217_p0 }
  0x30   : > { %221 = sbr.rel (%p218_p1) target bundleno = 194 (0xc2), region = 28 }
  0x35   : > { %s1342_s29 = sand.u32 1, %s1222_s16  }
  0x36   : > { %s1008_s30 = sshll.u32 %s1342_s29, 7  ;;  %s224_s5 = scalar_lea.sflag [#allocation5], %s1342_s29 }
  0x37   : > { %s1346_s6 = scalar_lea.vmem [#allocation4], %s1008_s30 }
  0x38   : > { %1209 = dma.done.wait (%p1316_p8), %s224_s5, 2048  }
  0x39   : > { %1211 = vsyncadd (%p1316_p8), %s224_s5, 4294965248  ;;  %v324_v0 = vlaneseq  ;;  %p266_p2 = scmp.lt.s32.totalorder %s1230_s18, 1  ;;  %s493_s4 = sld [smem:[#allocation3]]  ;;  %v1355_v9 = vld [vmem:[%s1346_s6] sm:$0xff]  ;;  %v1358_v10 = vld [vmem:[%s1346_s6 + $0x8] sm:$0xff] }
  0x3a   : > { %v1361_v11 = vld [vmem:[%s1346_s6 + $0x10] sm:$0xff]  ;;  %v1364_v13 = vld [vmem:[%s1346_s6 + $0x18] sm:$0xff]  ;;  %v1367_v14 = vld [vmem:[%s1346_s6 + $0x20] sm:$0xff]  ;;  %v457_v31 = vcombine.high %v1355_v9, %v1355_v9  ;;  %s1554_s10 = sld [smem:[#allocation3 + $0x1]]  ;;  %s1016_s13 = smul.u32 24, %s1342_s29 }
  0x3b   : > { %v325_v1 = vshrl.u32 %v324_v0, 7  ;;  %v330_v2 = vand.u32 127, %v324_v0  ;;  %s267_s25 = scalar_select %p266_p2, %s1230_s18, 1  ;;  %v1370_v15 = vld [vmem:[%s1346_s6 + $0x28] sm:$0xff]  ;;  %v1382_v18 = vld [vmem:[%s1346_s6 + $0x30] sm:$0xff]  ;;  %v1385_v19 = vld [vmem:[%s1346_s6 + $0x38] sm:$0xff]  ;;  %v349_v23 = vmax.f32 %v1355_v9, %v1367_v14 }
  0x3c   : > { %v1388_v20 = vld [vmem:[%s1346_s6 + $0x40] sm:$0xff]  ;;  %v352_v24 = vmax.f32 %v1358_v10, %v1370_v15  ;;  %v1399_v25 = vld [vmem:[%s1346_s6 + $0x48] sm:$0xff]  ;;  %v1402_v26 = vld [vmem:[%s1346_s6 + $0x50] sm:$0xff]  ;;  %v355_v29 = vmax.f32 %v1361_v11, %v1382_v18  ;;  %v358_v30 = vmax.f32 %v1364_v13, %v1385_v19  ;;  %s1645_s11 = sld [smem:[#allocation3 + $0x2]]  ;;  %s1993_s14 = scalar_lea.vmem [#allocation7], %s1016_s13 }
  0x3d   : > { %v326_v3 = vadd.s32 8, %v325_v1  ;;  %v327_v4 = vadd.s32 16, %v325_v1  ;;  %v328_v5 = vadd.s32 24, %v325_v1  ;;  %v337_v6 = vmul.u32 128, %v325_v1  ;;  %s1379_s9 = scalar_lea.vmem %s2137_s2, %s267_s25  ;;  %v1405_v27 = vld [vmem:[%s1346_s6 + $0x58] sm:$0xff]  ;;  %v1416_v32 = vld [vmem:[%s1346_s6 + $0x60] sm:$0xff] }
  0x3e   : > { %v1419_v33 = vld [vmem:[%s1346_s6 + $0x68] sm:$0xff]  ;;  %v1422_v34 = vld [vmem:[%s1346_s6 + $0x70] sm:$0xff]  ;;  %v350_v35 = vmax.f32 %v349_v23, %v1388_v20  ;;  %v353_v36 = vmax.f32 %v352_v24, %v1399_v25  ;;  %v1431_v39 = vld [vmem:[%s1346_s6 + $0x78] sm:$0xff]  ;;  %v356_v42 = vmax.f32 %v355_v29, %v1402_v26  ;;  %v359_v43 = vmax.f32 %v358_v30, %v1405_v27  ;;  %s1731_s12 = sld [smem:[#allocation3 + $0x3]]  ;;  %s1017_s0 = smul.u32 384, %s1230_s18 }
  0x3f   : > { %v338_v7 = vmul.u32 128, %v326_v3  ;;  %v339_v8 = vmul.u32 128, %v327_v4  ;;  %v1372_v16 = vadd.s32 %v337_v6, %v330_v2  ;;  %v1374_v17 = vstv %s493_s4  ;;  %v300_v40 = vld [vmem:[%s1379_s9] sm:$0x1]  ;;  %v301_v41 = vld [vmem:[%s1379_s9 + $0x1] sm:$0x1] }
  0x40   : > { %v340_v12 = vmul.u32 128, %v328_v5  ;;  %v302_v46 = vld [vmem:[%s1379_s9 + $0x2] sm:$0x1]  ;;  %v303_v47 = vld [vmem:[%s1379_s9 + $0x3] sm:$0x1]  ;;  %v308_v49 = vunpack.c.0.s8 %v300_v40  ;;  %v309_v50 = vunpack.c.0.s8 %v301_v41  ;;  %v1445_v51 = vmax.f32 %v350_v35, %v1416_v32  ;;  %s895_s21 = sshll.u32 %s1993_s14, 4  ;;  %s2086_s30 = scalar_lea.hbm %s2138_s3, %s1017_s0  ;;  %s2081_s21 = int_to_ptr.vmem [resolvable:$true] %s895_s21 }
  0x41   : > { %v1390_v21 = vadd.s32 %v338_v7, %v330_v2  ;;  %v1392_v22 = vadd.s32 %v339_v8, %v330_v2  ;;  %v304_v48 = vld [vmem:[%s1379_s9 + $0x4] sm:$0x1]  ;;  %v1448_v52 = vmax.f32 %v353_v36, %v1419_v33  ;;  %v305_v53 = vld [vmem:[%s1379_s9 + $0x5] sm:$0x1]  ;;  %v306_v54 = vld [vmem:[%s1379_s9 + $0x6] sm:$0x1]  ;;  %v310_v56 = vunpack.c.0.s8 %v302_v46 }
  0x42   : > { %v1407_v28 = vadd.s32 %v340_v12, %v330_v2  ;;  %v307_v55 = vld [vmem:[%s1379_s9 + $0x7] sm:$0x1]  ;;  %v311_v57 = vunpack.c.0.s8 %v303_v47  ;;  %v312_v58 = vunpack.c.0.s8 %v304_v48  ;;  %v1454_v59 = vmax.f32 %v356_v42, %v1422_v34  ;;  %s880_s5 = scalar_lea.sflag [#allocation6], %s1342_s29  ;;  %s1156_s6 = scalar_lea.vmem %s2081_s21, 384 }
  0x43   : > { %v313_v60 = vunpack.c.0.s8 %v305_v53  ;;  %v314_v61 = vunpack.c.0.s8 %v306_v54  ;;  %v315_v62 = vunpack.c.0.s8 %v307_v55  ;;  %v1456_v63 = vand.u32 255, %v308_v49  ;;  %p1157_p3 = scmp.ne.s32.totalorder %s2081_s21, %s1156_s6  ;;  %s1247_s18 = smov [#allocation7]  }
  0x44   : > { %v1458_v0 = vand.u32 255, %v309_v50  ;;  %v1460_v1 = vand.u32 255, %v310_v56  ;;  %v1462_v2 = vand.u32 255, %v311_v57  ;;  %v1464_v3 = vand.u32 255, %v312_v58  ;;  %s1160_s4 = sshll.u32 %s1247_s18, 4  ;;  %s1161_s4 = int_to_ptr.vmem [resolvable:$false] %s1160_s4 }
  0x45   : > { %v1466_v4 = vand.u32 255, %v313_v60  ;;  %v1468_v5 = vand.u32 255, %v314_v61  ;;  %v1470_v6 = vand.u32 255, %v315_v62  ;;  %v1473_v7 = vmax.f32 %v359_v43, %v1431_v39  ;;  %p1158_p4 = pnand %p1157_p3, %p1320_p9  ;;  %s1162_s25 = scalar_lea.vmem %s1161_s4, 768 }
  0x46   : > { %v361_v8 = vsub.f32 %v1355_v9, %v1445_v51  ;;  %v362_v12 = vsub.f32 %v1358_v10, %v1448_v52  ;;  %v363_v23 = vsub.f32 %v1361_v11, %v1454_v59  ;;  %v365_v24 = vsub.f32 %v1367_v14, %v1445_v51  ;;  %p1163_p6 = scmp.lt.s32.totalorder %s2081_s21, %s1161_s4  ;;  %p1164_p7 = scmp.lt.s32.totalorder %s1162_s25, %s1156_s6 }
  0x47   : > { %v364_v29 = vsub.f32 %v1364_v13, %v1473_v7  ;;  %v366_v30 = vsub.f32 %v1370_v15, %v1448_v52  ;;  %v367_v35 = vsub.f32 %v1382_v18, %v1454_v59  ;;  %v368_v36 = vsub.f32 %v1385_v19, %v1473_v7  ;;  %p1159_p5 = pneg %p1158_p4 }
  0x48   : > { %v369_v40 = vsub.f32 %v1388_v20, %v1445_v51  ;;  %v370_v41 = vsub.f32 %v1399_v25, %v1448_v52  ;;  %v371_v42 = vsub.f32 %v1402_v26, %v1454_v59  ;;  %v372_v43 = vsub.f32 %v1405_v27, %v1473_v7  ;;  %p1165_p8 = por %p1164_p7, %p1163_p6 }
  0x49   : > { %v373_v46 = vsub.f32 %v1416_v32, %v1445_v51  ;;  %v374_v47 = vsub.f32 %v1419_v33, %v1448_v52  ;;  %v375_v48 = vsub.f32 %v1422_v34, %v1454_v59  ;;  %v376_v49 = vsub.f32 %v1431_v39, %v1473_v7 }
  0x4a   : > { %v377_v50 = vmul.f32 1.442695, %v361_v8  ;;  %v379_v53 = vmul.f32 1.442695, %v362_v12  ;;  %v381_v54 = vmul.f32 1.442695, %v363_v23  ;;  %v529_v60 = vcombine.high %v1382_v18, %v1382_v18  ;;  %p1166_p10 = pnand %p1165_p8, %p1159_p5 }
  0x4b   : > { %v383_v56 = vmul.f32 1.442695, %v364_v29  ;;  %v385_v57 = vmul.f32 1.442695, %v365_v24  ;;  %v387_v58 = vmul.f32 1.442695, %v366_v30 }
  0x4c   : > { %1100 = vpow2.f32 %v377_v50  ;;  %v389_v61 = vmul.f32 1.442695, %v367_v35  ;;  %v391_v62 = vmul.f32 1.442695, %v368_v36  ;;  %v393_v45 = vmul.f32 1.442695, %v369_v40 }
  0x4d   : > { %1102 = vpow2.f32 %v379_v53  ;;  %v395_v44 = vmul.f32 1.442695, %v370_v41  ;;  %v397_v38 = vmul.f32 1.442695, %v371_v42  ;;  %v399_v37 = vmul.f32 1.442695, %v372_v43 }
  0x4e   : > { %1104 = vpow2.f32 %v381_v54  ;;  %v401_v8 = vmul.f32 1.442695, %v373_v46  ;;  %v403_v12 = vmul.f32 1.442695, %v374_v47  ;;  %v405_v23 = vmul.f32 1.442695, %v375_v48 }
  0x4f   : > { %1106 = vpow2.f32 %v383_v56  ;;  %v407_v55 = vmul.f32 1.442695, %v376_v49  ;;  %vm2175_vm0 = vcmp.eq.s32.totalorder %v1456_v63, 0  ;;  %vm2173_vm1 = vcmp.eq.s32.totalorder %v1458_v0, 0 }
  0x50   : > { %1108 = vpow2.f32 %v385_v57  ;;  %vm2163_vm2 = vcmp.eq.s32.totalorder %v1460_v1, 0  ;;  %vm2158_vm3 = vcmp.eq.s32.totalorder %v1462_v2, 0  ;;  %vm2160_vm4 = vcmp.eq.s32.totalorder %v1464_v3, 0 }
  0x51   : > { %1110 = vpow2.f32 %v387_v58  ;;  %vm2157_vm5 = vcmp.eq.s32.totalorder %v1466_v4, 0  ;;  %vm2151_vm6 = vcmp.eq.s32.totalorder %v1468_v5, 0  ;;  %vm2150_vm7 = vcmp.eq.s32.totalorder %v1470_v6, 0 }
  0x52   : > { %1112 = vpow2.f32 %v389_v61  ;;  %v465_v24 = vsel %vm2175_vm0, %v1355_v9, 0.0  ;;  %v466_v29 = vsel %vm2173_vm1, %v457_v31, 0.0  ;;  %v467_v30 = vsel %vm2163_vm2, %v1358_v10, 0.0 }
  0x53   : > { %1114 = vpow2.f32 %v391_v62  ;;  %v2179_v35 = vcombine.high %v1358_v10, %v1358_v10  ;;  %v469_v40 = vsel %vm2160_vm4, %v1361_v11, 0.0  ;;  %v2180_v9 = vcombine.high %v1361_v11, %v1361_v11 }
  0x54   : > { %1116 = vpow2.f32 %v393_v45  ;;  %v471_v41 = vsel %vm2151_vm6, %v1364_v13, 0.0  ;;  %v2181_v10 = vcombine.high %v1364_v13, %v1364_v13  ;;  %v495_v43 = vsel %vm2175_vm0, %v1374_v17, 0.0 }
  0x55   : > { %v468_v36 = vsel %vm2158_vm3, %v2179_v35, 0.0  ;;  %v470_v31 = vsel %vm2157_vm5, %v2180_v9, 0.0  ;;  %1118 = vpow2.f32 %v395_v44  ;;  %v496_v11 = vsel %vm2173_vm1, %v1374_v17, 0.0 }
  0x56   : > { %v472_v42 = vsel %vm2150_vm7, %v2181_v10, 0.0  ;;  %v497_v45 = vsel %vm2163_vm2, %v1374_v17, 0.0  ;;  %v498_v13 = vsel %vm2158_vm3, %v1374_v17, 0.0  ;;  %1120 = vpow2.f32 %v397_v38 }
  0x57   : > { %v499_v46 = vsel %vm2160_vm4, %v1374_v17, 0.0  ;;  %v500_v44 = vsel %vm2157_vm5, %v1374_v17, 0.0  ;;  %v501_v47 = vsel %vm2151_vm6, %v1374_v17, 0.0  ;;  %1122 = vpow2.f32 %v399_v37 }
  0x58   : > { %v502_v48 = vsel %vm2150_vm7, %v1374_v17, 0.0  ;;  %vm2146_vm8 = vcmp.eq.s32.totalorder %v1456_v63, 1  ;;  %vm2145_vm9 = vcmp.eq.s32.totalorder %v1458_v0, 1  ;;  %1124 = vpow2.f32 %v401_v8 }
  0x59   : > { %vm2143_vm10 = vcmp.eq.s32.totalorder %v1460_v1, 1  ;;  %vm2139_vm11 = vcmp.eq.s32.totalorder %v1462_v2, 1  ;;  %vm2140_vm12 = vcmp.eq.s32.totalorder %v1464_v3, 1  ;;  %v1582_v38 = vpop.eup %1100  ;;  %1126 = vpow2.f32 %v403_v12 }
  0x5a   : > { %vm2142_vm13 = vcmp.eq.s32.totalorder %v1466_v4, 1  ;;  %vm2141_vm14 = vcmp.eq.s32.totalorder %v1468_v5, 1  ;;  %vm2144_vm15 = vcmp.eq.s32.totalorder %v1470_v6, 1  ;;  %v1587_v17 = vpop.eup %1102  ;;  %1128 = vpow2.f32 %v405_v23 }
  0x5b   : > { %v530_v37 = vcombine.high %v1385_v19, %v1385_v19  ;;  %v535_v49 = vsel %vm2146_vm8, %v1367_v14, %v465_v24  ;;  %v2182_v50 = vcombine.high %v1367_v14, %v1367_v14  ;;  %v1599_v54 = vpop.eup %1104  ;;  %1130 = vpow2.f32 %v407_v55 }
  0x5c   : > { %v537_v56 = vsel %vm2143_vm10, %v1370_v15, %v467_v30  ;;  %v2183_v57 = vcombine.high %v1370_v15, %v1370_v15  ;;  %v539_v14 = vsel %vm2140_vm12, %v1382_v18, %v469_v40  ;;  %v1612_v61 = vpop.eup %1106  ;;  %v540_v55 = vsel %vm2142_vm13, %v529_v60, %v470_v31 }
  0x5d   : > { %v536_v53 = vsel %vm2145_vm9, %v2182_v50, %v466_v29  ;;  %v541_v62 = vsel %vm2141_vm14, %v1385_v19, %v471_v41  ;;  %v542_v15 = vsel %vm2144_vm15, %v530_v37, %v472_v42  ;;  %v564_v8 = vstv %s1554_s10  ;;  %v1625_v12 = vpop.eup %1108 }
  0x5e   : > { %v538_v58 = vsel %vm2139_vm11, %v2183_v57, %v468_v36  ;;  %v565_v23 = vsel %vm2146_vm8, %v564_v8, %v495_v43  ;;  %v566_v24 = vsel %vm2145_vm9, %v564_v8, %v496_v11  ;;  %v567_v18 = vsel %vm2143_vm10, %v564_v8, %v497_v45  ;;  %v1635_v29 = vpop.eup %1110 }
  0x5f   : > { %v568_v60 = vsel %vm2139_vm11, %v564_v8, %v498_v13  ;;  %v409_v19 = vadd.f32 %v1625_v12, %v1582_v38  ;;  %v569_v30 = vsel %vm2140_vm12, %v564_v8, %v499_v46  ;;  %v570_v35 = vsel %vm2142_vm13, %v564_v8, %v500_v44  ;;  %v1647_v40 = vpop.eup %1112 }
  0x60   : > { %v571_v36 = vsel %vm2141_vm14, %v564_v8, %v501_v47  ;;  %v412_v9 = vadd.f32 %v1635_v29, %v1587_v17  ;;  %v572_v31 = vsel %vm2144_vm15, %v564_v8, %v502_v48  ;;  %vm2152_vm11 = vcmp.eq.s32.totalorder %v1456_v63, 2  ;;  %v1655_v41 = vpop.eup %1114 }
  0x61   : > { %vm2153_vm12 = vcmp.eq.s32.totalorder %v1458_v0, 2  ;;  %2184 = vst [vmem:[#allocation13_spill] sm:$0xff] %v1655_v41  ;;  %v415_v10 = vadd.f32 %v1647_v40, %v1599_v54  ;;  %vm2155_vm14 = vcmp.eq.s32.totalorder %v1460_v1, 2  ;;  %vm2154_vm13 = vcmp.eq.s32.totalorder %v1462_v2, 2  ;;  %v1662_v42 = vpop.eup %1116 }
  0x62   : > { %vm2156_vm10 = vcmp.eq.s32.totalorder %v1464_v3, 2  ;;  %2185 = vst [vmem:[#allocation14_spill] sm:$0xff] %v1662_v42  ;;  %v418_v43 = vadd.f32 %v1655_v41, %v1612_v61  ;;  %vm2159_vm15 = vcmp.eq.s32.totalorder %v1466_v4, 2  ;;  %vm2161_vm9 = vcmp.eq.s32.totalorder %v1468_v5, 2  ;;  %v1669_v11 = vpop.eup %1118 }
  0x63   : > { %vm2162_vm8 = vcmp.eq.s32.totalorder %v1470_v6, 2  ;;  %2186 = vst [vmem:[#allocation15_spill] sm:$0xff] %v1669_v11  ;;  %v410_v45 = vadd.f32 %v1662_v42, %v409_v19  ;;  %v597_v13 = vcombine.high %v1388_v20, %v1388_v20  ;;  %v598_v46 = vcombine.high %v1399_v25, %v1399_v25  ;;  %v1678_v47 = vpop.eup %1120 }
  0x64   : > { %v599_v44 = vcombine.high %v1402_v26, %v1402_v26  ;;  %v413_v48 = vadd.f32 %v1669_v11, %v412_v9  ;;  %v600_v37 = vcombine.high %v1405_v27, %v1405_v27  ;;  %v605_v50 = vsel %vm2152_vm11, %v1388_v20, %v535_v49  ;;  %v1689_v8 = vpop.eup %1122 }
  0x65   : > { %v607_v57 = vsel %vm2155_vm14, %v1399_v25, %v537_v56  ;;  %v416_v19 = vadd.f32 %v1678_v47, %v415_v10  ;;  %v606_v42 = vsel %vm2153_vm12, %v597_v13, %v536_v53  ;;  %v608_v9 = vsel %vm2154_vm13, %v598_v46, %v538_v58  ;;  %v1699_v41 = vpop.eup %1124 }
  0x66   : > { %v609_v11 = vsel %vm2156_vm10, %v1402_v26, %v539_v14  ;;  %v419_v20 = vadd.f32 %v1689_v8, %v418_v43  ;;  %v610_v25 = vsel %vm2159_vm15, %v599_v44, %v540_v55  ;;  %v611_v49 = vsel %vm2161_vm9, %v1405_v27, %v541_v62  ;;  %v1709_v56 = vpop.eup %1126 }
  0x67   : > { %v612_v53 = vsel %vm2162_vm8, %v600_v37, %v542_v15  ;;  %v411_v58 = vadd.f32 %v1699_v41, %v410_v45  ;;  %v634_v10 = vstv %s1645_s11  ;;  %vm2168_vm7 = vcmp.eq.s32.totalorder %v1456_v63, 3  ;;  %v1715_v26 = vpop.eup %1128 }
  0x68   : > { %vm2166_vm6 = vcmp.eq.s32.totalorder %v1458_v0, 3  ;;  %v414_v14 = vadd.f32 %v1709_v56, %v413_v48  ;;  %v635_v55 = vsel %vm2152_vm11, %v634_v10, %v565_v23  ;;  %v636_v27 = vsel %vm2153_vm12, %v634_v10, %v566_v24  ;;  %v1724_v15 = vpop.eup %1130 }
  0x69   : > { %v637_v62 = vsel %vm2155_vm14, %v634_v10, %v567_v18  ;;  %v417_v43 = vadd.f32 %v1715_v26, %v416_v19  ;;  %1132 = vlog2.f32 %v411_v58  ;;  %v638_v45 = vsel %vm2154_vm13, %v634_v10, %v568_v60 }
  0x6a   : > { %v639_v13 = vsel %vm2156_vm10, %v634_v10, %v569_v30  ;;  %vm2172_vm11 = vcmp.lt.s32.totalorder %v1372_v16, 256  ;;  %vm2174_vm12 = vcmp.lt.s32.totalorder %v1390_v21, 256  ;;  %v420_v23 = vadd.f32 %v1724_v15, %v419_v20 }
  0x6b   : > { %1134 = vlog2.f32 %v414_v14  ;;  %v640_v24 = vsel %vm2159_vm15, %v634_v10, %v570_v35  ;;  %v641_v18 = vsel %vm2161_vm9, %v634_v10, %v571_v36  ;;  %vm347_vm13 = vcmp.lt.s32.totalorder %v1392_v22, 256 }
  0x6c   : > { %vm348_vm14 = vcmp.lt.s32.totalorder %v1407_v28, 256  ;;  %1136 = vlog2.f32 %v417_v43  ;;  %v642_v60 = vsel %vm2162_vm8, %v634_v10, %v572_v31  ;;  %vm2164_vm10 = vcmp.eq.s32.totalorder %v1460_v1, 3 }
  0x6d   : > { %vm2165_vm5 = vcmp.eq.s32.totalorder %v1462_v2, 3  ;;  %1138 = vlog2.f32 %v420_v23  ;;  %vm2167_vm3 = vcmp.eq.s32.totalorder %v1464_v3, 3  ;;  %vm2169_vm15 = vcmp.eq.s32.totalorder %v1466_v4, 3 }
  0x6e   : > { %vm2171_vm4 = vcmp.eq.s32.totalorder %v1468_v5, 3  ;;  %1140 = vrcp.f32 %v411_v58  ;;  %vm2170_vm9 = vcmp.eq.s32.totalorder %v1470_v6, 3  ;;  %v667_v30 = vcombine.high %v1416_v32, %v1416_v32 }
  0x6f   : > { %v668_v35 = vcombine.high %v1419_v33, %v1419_v33  ;;  %1142 = vrcp.f32 %v414_v14  ;;  %v669_v36 = vcombine.high %v1422_v34, %v1422_v34  ;;  %v670_v31 = vcombine.high %v1431_v39, %v1431_v39 }
  0x70   : > { %v1761_v46 = vsel %vm2168_vm7, %v1416_v32, %v605_v50  ;;  %1144 = vrcp.f32 %v417_v43  ;;  %v676_v44 = vsel %vm2166_vm6, %v667_v30, %v606_v42  ;;  %v1768_v48 = vsel %vm2164_vm10, %v1419_v33, %v607_v57 }
  0x71   : > { %v1772_v37 = vsel %vm2165_vm5, %v668_v35, %v608_v9  ;;  %1146 = vrcp.f32 %v420_v23  ;;  %v1777_v19 = vsel %vm2167_vm3, %v1422_v34, %v609_v11  ;;  %v1781_v32 = vsel %vm2169_vm15, %v669_v36, %v610_v25 }
  0x72   : > { %v1786_v42 = vsel %vm2171_vm4, %v1431_v39, %v611_v49  ;;  %v1790_v33 = vsel %vm2170_vm9, %v670_v31, %v612_v53  ;;  %v704_v50 = vstv %s1731_s12  ;;  %vm713_vm8 = vcmp.ne.s32.totalorder %v1456_v63, 255 }
  0x73   : > { %vm714_vm2 = vcmp.ne.s32.totalorder %v1458_v0, 255  ;;  %v1797_v34 = vsel %vm2168_vm7, %v704_v50, %v635_v55  ;;  %v1801_v11 = vsel %vm2166_vm6, %v704_v50, %v636_v27  ;;  %v1805_v39 = vsel %vm2164_vm10, %v704_v50, %v637_v62 }
  0x74   : > { %v1809_v57 = vsel %vm2165_vm5, %v704_v50, %v638_v45  ;;  %v1813_v9 = vsel %vm2167_vm3, %v704_v50, %v639_v13  ;;  %v1817_v20 = vsel %vm2169_vm15, %v704_v50, %v640_v24  ;;  %v1821_v25 = vsel %vm2171_vm4, %v704_v50, %v641_v18 }
  0x75   : > { %v1825_v49 = vsel %vm2170_vm9, %v704_v50, %v642_v60  ;;  %vm715_vm10 = vcmp.ne.s32.totalorder %v1460_v1, 255  ;;  %vm716_vm5 = vcmp.ne.s32.totalorder %v1462_v2, 255  ;;  %vm717_vm6 = vcmp.ne.s32.totalorder %v1464_v3, 255  ;;  %vm1845_vm9 = vmand %vm713_vm8, %vm2172_vm11 }
  0x76   : > { %vm718_vm3 = vcmp.ne.s32.totalorder %v1466_v4, 255  ;;  %vm719_vm7 = vcmp.ne.s32.totalorder %v1468_v5, 255  ;;  %vm720_vm15 = vcmp.ne.s32.totalorder %v1470_v6, 255  ;;  %v1246_v53 = vmov 0   ;;  %v1133_v14 = vpop.eup %1132  ;;  %vm1853_vm4 = vmand %vm715_vm10, %vm2174_vm12 }
  0x77   : > { %v721_v58 = vsel %vm2172_vm11, 1, %v1246_v53  ;;  %v722_v10 = vsel %vm2174_vm12, 1, %v1246_v53  ;;  %v723_v55 = vsel %vm347_vm13, 1, %v1246_v53  ;;  %v724_v27 = vsel %vm348_vm14, 1, %v1246_v53  ;;  %vm1862_vm1 = vmand %vm717_vm6, %vm347_vm13 }
  0x78   : > { %v725_v62 = vcombine.high %v721_v58, %v721_v58  ;;  %v726_v43 = vcombine.high %v722_v10, %v722_v10  ;;  %v1135_v13 = vpop.eup %1134  ;;  %v422_v23 = vmul.f32 0.6931472, %v1133_v14  ;;  %v727_v24 = vcombine.high %v723_v55, %v723_v55 }
  0x79   : > { %v728_v18 = vcombine.high %v724_v27, %v724_v27  ;;  %v753_v30 = vcombine.low %v1761_v46, %v676_v44  ;;  %v1137_v35 = vpop.eup %1136  ;;  %v424_v36 = vmul.f32 0.6931472, %v1135_v13  ;;  %v754_v50 = vcombine.low %v1768_v48, %v1772_v37 }
  0x7a   : > { %vm729_vm8 = vcmp.ne.s32.totalorder %v725_v62, 0  ;;  %vm730_vm11 = vcmp.ne.s32.totalorder %v726_v43, 0  ;;  %v1139_v53 = vpop.eup %1138  ;;  %v426_v58 = vmul.f32 0.6931472, %v1137_v35  ;;  %vm731_vm10 = vcmp.ne.s32.totalorder %v727_v24, 0 }
  0x7b   : > { %vm1868_vm12 = vcmp.ne.s32.totalorder %v728_v18, 0  ;;  %vm1874_vm0 = vmand %vm714_vm2, %vm729_vm8  ;;  %v741_v10 = vadd.f32 %v422_v23, %v1445_v51  ;;  %v1879_v14 = vpop.eup %1140  ;;  %v428_v55 = vmul.f32 0.6931472, %v1139_v53  ;;  %v742_v37 = vadd.f32 %v424_v36, %v1448_v52 }
  0x7c   : > { %vm1883_vm6 = vmand %vm716_vm5, %vm730_vm11  ;;  %v755_v27 = vcombine.low %v1777_v19, %v1781_v32  ;;  %v756_v62 = vcombine.low %v1786_v42, %v1790_v33  ;;  %v1892_v43 = vpop.eup %1142  ;;  %v743_v13 = vadd.f32 %v426_v58, %v1454_v59  ;;  %v793_v52 = vsel %vm1845_vm9, %v1797_v34, 0.0 }
  0x7d   : > { %vm1896_vm2 = vmand %vm718_vm3, %vm731_vm10  ;;  %v761_v23 = vsub.f32 %v741_v10, %v753_v30  ;;  %v794_v19 = vsel %vm1874_vm0, %v1801_v11, 0.0  ;;  %v1907_v32 = vpop.eup %1144  ;;  %v744_v42 = vadd.f32 %v428_v55, %v1473_v7  ;;  %v762_v33 = vsub.f32 %v742_v37, %v754_v50 }
  0x7e   : > { %v795_v24 = vsel %vm1853_vm4, %v1805_v39, 0.0  ;;  %v796_v59 = vsel %vm1883_vm6, %v1809_v57, 0.0  ;;  %v1916_v18 = vpop.eup %1146  ;;  %v763_v30 = vsub.f32 %v743_v13, %v755_v27  ;;  %v797_v53 = vsel %vm1862_vm1, %v1813_v9, 0.0  ;;  %vm1926_vm3 = vmand %vm719_vm7, %vm348_vm14 }
  0x7f   : > { %v769_v35 = vcombine.high %v761_v23, %v761_v23  ;;  %v777_v36 = vmul.f32 %v761_v23, %v1797_v34  ;;  %v764_v50 = vsub.f32 %v744_v42, %v756_v62  ;;  %v770_v58 = vcombine.high %v762_v33, %v762_v33  ;;  %vm1942_vm5 = vmand %vm720_vm15, %vm1868_vm12 }
  0x80   : > { %v779_v10 = vmul.f32 %v762_v33, %v1805_v39  ;;  %v798_v34 = vsel %vm1896_vm2, %v1817_v20, 0.0  ;;  %v771_v55 = vcombine.high %v763_v30, %v763_v30  ;;  %v781_v27 = vmul.f32 %v763_v30, %v1813_v9 }
  0x81   : > { %v778_v37 = vmul.f32 %v769_v35, %v1801_v11  ;;  %v785_v13 = vsel %vm1845_vm9, %v777_v36, 0.0  ;;  %v772_v39 = vcombine.high %v764_v50, %v764_v50  ;;  %v780_v23 = vmul.f32 %v770_v58, %v1809_v57 }
  0x82   : > { %v783_v42 = vmul.f32 %v764_v50, %v1821_v25  ;;  %v787_v11 = vsel %vm1853_vm4, %v779_v10, 0.0  ;;  %v782_v9 = vmul.f32 %v771_v55, %v1817_v20  ;;  %v789_v46 = vsel %vm1862_vm1, %v781_v27, 0.0 }
  0x83   : > { %v786_v45 = vsel %vm1874_vm0, %v778_v37, 0.0  ;;  %v799_v33 = vsel %vm1926_vm3, %v1821_v25, 0.0  ;;  %v784_v30 = vmul.f32 %v772_v39, %v1825_v49  ;;  %v788_v57 = vsel %vm1883_vm6, %v780_v23, 0.0 }
  0x84   : > { %v791_v60 = vsel %vm1926_vm3, %v783_v42, 0.0  ;;  %v840_v20 = vcombine.low %v785_v13, %v786_v45  ;;  %v790_v44 = vsel %vm1896_vm2, %v782_v9, 0.0  ;;  %v841_v35 = vcombine.low %v787_v11, %v788_v57 }
  0x85   : > { %v800_v31 = vsel %vm1942_vm5, %v1825_v49, 0.0  ;;  %v859_v36 = vcombine.low %v793_v52, %v794_v19  ;;  %v792_v25 = vsel %vm1942_vm5, %v784_v30, 0.0  ;;  %v842_v50 = vcombine.low %v789_v46, %v790_v44 }
  0x86   : > { %v860_v48 = vcombine.low %v795_v24, %v796_v59  ;;  %v861_v58 = vcombine.low %v797_v53, %v798_v34  ;;  %v843_v10 = vcombine.low %v791_v60, %v792_v25  ;;  %v848_v55 = vadd.f32 %v841_v35, %v840_v20  ;;  %v2214_v25 = vld [vmem:[#allocation14_spill] sm:$0xff] }
  0x87   : > { %v862_v7 = vcombine.low %v799_v33, %v800_v31  ;;  %v441_v37 = vmul.f32 %v1879_v14, %v1582_v38  ;;  %v442_v27 = vmul.f32 %v1892_v43, %v1587_v17  ;;  %v443_v49 = vmul.f32 %v1907_v32, %v1599_v54 }
  0x88   : > { %v867_v51 = vadd.f32 %v860_v48, %v859_v36  ;;  %v444_v52 = vmul.f32 %v1916_v18, %v1612_v61  ;;  %v849_v19 = vadd.f32 %v848_v55, %v842_v50  ;;  %v511_v59 = vmul.f32 %v1879_v14, %v1625_v12  ;;  %v2215_v48 = vld [vmem:[#allocation15_spill] sm:$0xff] }
  0x89   : > { %v445_v24 = vmax.f32 %v441_v37, 1e-07  ;;  %v446_v34 = vmax.f32 %v442_v27, 1e-07  ;;  %v447_v13 = vmax.f32 %v443_v49, 1e-07  ;;  %v512_v17 = vmul.f32 %v1892_v43, %v1635_v29 }
  0x8a   : > { %v868_v53 = vadd.f32 %v867_v51, %v861_v58  ;;  %v448_v38 = vmax.f32 %v444_v52, 1e-07  ;;  %v850_v62 = vadd.f32 %v849_v19, %v843_v10  ;;  %v513_v54 = vmul.f32 %v1907_v32, %v1647_v40  ;;  %v2210_v40 = vld [vmem:[#allocation13_spill] sm:$0xff] }
  0x8b   : > { %v477_v39 = vcombine.high %v445_v24, %v445_v24  ;;  %v478_v42 = vcombine.high %v446_v34, %v446_v34  ;;  %v479_v61 = vcombine.high %v447_v13, %v447_v13  ;;  %vm2205_vm0 = vcmp.eq.s32.totalorder %v1456_v63, 0 }
  0x8c   : > { %v869_v23 = vadd.f32 %v868_v53, %v862_v7  ;;  %v480_v11 = vcombine.high %v448_v38, %v448_v38  ;;  %v485_v9 = vsel %vm2205_vm0, %v445_v24, 0.0  ;;  %vm2206_vm1 = vcmp.eq.s32.totalorder %v1458_v0, 0  ;;  %876 = vst [vmem:[%s1993_s14] sm:$0xff] %v850_v62 }
  0x8d   : > { %v486_v12 = vsel %vm2206_vm1, %v477_v39, 0.0  ;;  %vm2207_vm4 = vcmp.eq.s32.totalorder %v1460_v1, 0  ;;  %vm2208_vm7 = vcmp.eq.s32.totalorder %v1464_v3, 0  ;;  %vm2209_vm9 = vcmp.eq.s32.totalorder %v1462_v2, 0 }
  0x8e   : > { %v487_v45 = vsel %vm2207_vm4, %v446_v34, 0.0  ;;  %v489_v46 = vsel %vm2208_vm7, %v447_v13, 0.0  ;;  %v488_v29 = vsel %vm2209_vm9, %v478_v42, 0.0  ;;  %v514_v33 = vmul.f32 %v1916_v18, %v2210_v40  ;;  %877 = vst [vmem:[%s1993_s14 + $0x8] sm:$0xff] %v869_v23 }
  0x8f   : > { %v515_v30 = vmax.f32 %v511_v59, 1e-07  ;;  %v516_v57 = vmax.f32 %v512_v17, 1e-07  ;;  %vm2211_vm11 = vcmp.eq.s32.totalorder %v1466_v4, 0  ;;  %vm2212_vm12 = vcmp.eq.s32.totalorder %v1468_v5, 0 }
  0x90   : > { %v490_v60 = vsel %vm2211_vm11, %v479_v61, 0.0  ;;  %v491_v20 = vsel %vm2212_vm12, %v448_v38, 0.0  ;;  %vm2213_vm15 = vcmp.eq.s32.totalorder %v1470_v6, 0  ;;  %v517_v35 = vmax.f32 %v513_v54, 1e-07 }
  0x91   : > { %v492_v44 = vsel %vm2213_vm15, %v480_v11, 0.0  ;;  %v518_v31 = vmax.f32 %v514_v33, 1e-07  ;;  %v547_v36 = vcombine.high %v515_v30, %v515_v30  ;;  %v581_v50 = vmul.f32 %v1879_v14, %v2214_v25 }
  0x92   : > { %v582_v58 = vmul.f32 %v1892_v43, %v2215_v48  ;;  %v519_v10 = vadd.f32 %v515_v30, %v445_v24  ;;  %v548_v55 = vcombine.high %v516_v57, %v516_v57  ;;  %v549_v7 = vcombine.high %v517_v35, %v517_v35 }
  0x93   : > { %v583_v37 = vmul.f32 %v1907_v32, %v1678_v47  ;;  %v520_v51 = vadd.f32 %v516_v57, %v446_v34  ;;  %v521_v27 = vadd.f32 %v517_v35, %v447_v13  ;;  %v550_v49 = vcombine.high %v518_v31, %v518_v31 }
  0x94   : > { %vm2216_vm8 = vcmp.eq.s32.totalorder %v1456_v63, 1  ;;  %v522_v19 = vadd.f32 %v518_v31, %v448_v38  ;;  %vm2217_vm10 = vcmp.eq.s32.totalorder %v1458_v0, 1  ;;  %vm2218_vm6 = vcmp.eq.s32.totalorder %v1460_v1, 1 }
  0x95   : > { %v555_v52 = vsel %vm2216_vm8, %v515_v30, %v485_v9  ;;  %v556_v59 = vsel %vm2217_vm10, %v547_v36, %v486_v12  ;;  %v557_v53 = vsel %vm2218_vm6, %v516_v57, %v487_v45  ;;  %vm2219_vm2 = vcmp.eq.s32.totalorder %v1462_v2, 1 }
  0x96   : > { %v558_v24 = vsel %vm2219_vm2, %v548_v55, %v488_v29  ;;  %vm2220_vm3 = vcmp.eq.s32.totalorder %v1464_v3, 1  ;;  %v584_v47 = vmul.f32 %v1916_v18, %v1689_v8  ;;  %v585_v34 = vmax.f32 %v581_v50, 1e-07 }
  0x97   : > { %v559_v62 = vsel %vm2220_vm3, %v517_v35, %v489_v46  ;;  %v586_v13 = vmax.f32 %v582_v58, 1e-07  ;;  %vm2221_vm5 = vcmp.eq.s32.totalorder %v1466_v4, 1  ;;  %vm2222_vm0 = vcmp.eq.s32.totalorder %v1468_v5, 1 }
  0x98   : > { %v560_v38 = vsel %vm2221_vm5, %v549_v7, %v490_v60  ;;  %v561_v39 = vsel %vm2222_vm0, %v518_v31, %v491_v20  ;;  %vm2223_vm1 = vcmp.eq.s32.totalorder %v1470_v6, 1  ;;  %v587_v54 = vmax.f32 %v583_v37, 1e-07 }
  0x99   : > { %v562_v17 = vsel %vm2223_vm1, %v550_v49, %v492_v44  ;;  %v588_v23 = vmax.f32 %v584_v47, 1e-07  ;;  %v617_v42 = vcombine.high %v585_v34, %v585_v34  ;;  %v651_v61 = vmul.f32 %v1879_v14, %v1699_v41 }
  0x9a   : > { %v652_v8 = vmul.f32 %v1892_v43, %v1709_v56  ;;  %v589_v11 = vadd.f32 %v585_v34, %v519_v10  ;;  %v618_v9 = vcombine.high %v586_v13, %v586_v13  ;;  %v619_v12 = vcombine.high %v587_v54, %v587_v54 }
  0x9b   : > { %v653_v45 = vmul.f32 %v1907_v32, %v1715_v26  ;;  %v590_v46 = vadd.f32 %v586_v13, %v520_v51  ;;  %v591_v29 = vadd.f32 %v587_v54, %v521_v27  ;;  %v620_v40 = vcombine.high %v588_v23, %v588_v23 }
  0x9c   : > { %vm2224_vm4 = vcmp.eq.s32.totalorder %v1456_v63, 2  ;;  %v592_v30 = vadd.f32 %v588_v23, %v522_v19  ;;  %vm2225_vm7 = vcmp.eq.s32.totalorder %v1458_v0, 2  ;;  %vm2226_vm9 = vcmp.eq.s32.totalorder %v1460_v1, 2 }
  0x9d   : > { %v625_v33 = vsel %vm2224_vm4, %v585_v34, %v555_v52  ;;  %v626_v57 = vsel %vm2225_vm7, %v617_v42, %v556_v59  ;;  %v627_v41 = vsel %vm2226_vm9, %v586_v13, %v557_v53  ;;  %vm2227_vm11 = vcmp.eq.s32.totalorder %v1462_v2, 2 }
  0x9e   : > { %v628_v56 = vsel %vm2227_vm11, %v618_v9, %v558_v24  ;;  %vm2228_vm12 = vcmp.eq.s32.totalorder %v1464_v3, 2  ;;  %v654_v26 = vmul.f32 %v1916_v18, %v1724_v15  ;;  %v655_v43 = vmax.f32 %v651_v61, 1e-07 }
  0x9f   : > { %v629_v14 = vsel %vm2228_vm12, %v587_v54, %v559_v62  ;;  %v656_v32 = vmax.f32 %v652_v8, 1e-07  ;;  %vm2229_vm15 = vcmp.eq.s32.totalorder %v1466_v4, 2  ;;  %vm2230_vm8 = vcmp.eq.s32.totalorder %v1468_v5, 2 }
  0xa0   : > { %v630_v60 = vsel %vm2229_vm15, %v619_v12, %v560_v38  ;;  %v631_v20 = vsel %vm2230_vm8, %v588_v23, %v561_v39  ;;  %vm2231_vm10 = vcmp.eq.s32.totalorder %v1470_v6, 2  ;;  %v657_v35 = vmax.f32 %v653_v45, 1e-07 }
  0xa1   : > { %v632_v44 = vsel %vm2231_vm10, %v620_v40, %v562_v17  ;;  %v658_v31 = vmax.f32 %v654_v26, 1e-07  ;;  %v659_v36 = vadd.f32 %v655_v43, %v589_v11  ;;  %v660_v25 = vadd.f32 %v656_v32, %v590_v46 }
  0xa2   : > { %v687_v50 = vcombine.high %v655_v43, %v655_v43  ;;  %v661_v48 = vadd.f32 %v657_v35, %v591_v29  ;;  %v688_v58 = vcombine.high %v656_v32, %v656_v32  ;;  %v689_v10 = vcombine.high %v657_v35, %v657_v35 }
  0xa3   : > { %vm2232_vm6 = vcmp.eq.s32.totalorder %v1456_v63, 3  ;;  %v662_v18 = vadd.f32 %v658_v31, %v592_v30  ;;  %v690_v55 = vcombine.high %v658_v31, %v658_v31  ;;  %vm2233_vm2 = vcmp.eq.s32.totalorder %v1458_v0, 3 }
  0xa4   : > { %v695_v15 = vsel %vm2232_vm6, %v655_v43, %v625_v33  ;;  %v696_v7 = vsel %vm2233_vm2, %v687_v50, %v626_v57  ;;  %vm2234_vm3 = vcmp.eq.s32.totalorder %v1460_v1, 3  ;;  %vm2235_vm5 = vcmp.eq.s32.totalorder %v1462_v2, 3 }
  0xa5   : > { %v697_v37 = vsel %vm2234_vm3, %v656_v32, %v627_v41  ;;  %v698_v51 = vsel %vm2235_vm5, %v688_v58, %v628_v56  ;;  %vm2236_vm0 = vcmp.eq.s32.totalorder %v1464_v3, 3  ;;  %vm2237_vm1 = vcmp.eq.s32.totalorder %v1466_v4, 3 }
  0xa6   : > { %v699_v27 = vsel %vm2236_vm0, %v657_v35, %v629_v14  ;;  %v700_v49 = vsel %vm2237_vm1, %v689_v10, %v630_v60  ;;  %vm2238_vm4 = vcmp.eq.s32.totalorder %v1468_v5, 3  ;;  %vm2239_vm7 = vcmp.eq.s32.totalorder %v1470_v6, 3 }
  0xa7   : > { %v701_v63 = vsel %vm2238_vm4, %v658_v31, %v631_v20  ;;  %v702_v52 = vsel %vm2239_vm7, %v690_v55, %v632_v44  ;;  %v809_v0 = vcombine.low %v695_v15, %v696_v7  ;;  %v810_v19 = vcombine.low %v697_v37, %v698_v51 }
  0xa8   : > { %v811_v59 = vcombine.low %v699_v27, %v700_v49  ;;  %v812_v1 = vcombine.low %v701_v63, %v702_v52  ;;  %vm2240_vm9 = vcmp.lt.s32.totalorder %v1372_v16, 256  ;;  %vm2241_vm11 = vcmp.lt.s32.totalorder %v1390_v21, 256 }
  0xa9   : > { %v817_v2 = vsub.f32 %v659_v36, %v809_v0  ;;  %v818_v53 = vsub.f32 %v660_v25, %v810_v19 }
  0xaa   : > { %v819_v24 = vsub.f32 %v661_v48, %v811_v59  ;;  %v820_v3 = vsub.f32 %v662_v18, %v812_v1 }
  0xab   : > { %v821_v62 = vmul.f32 9.2103405, %v817_v2  ;;  %v822_v4 = vmul.f32 9.2103405, %v818_v53 }
  0xac   : > { %v823_v47 = vmul.f32 9.2103405, %v819_v24  ;;  %v824_v5 = vmul.f32 9.2103405, %v820_v3 }
  0xad   : > { %v825_v6 = vsel %vm2240_vm9, %v821_v62, 0.0  ;;  %v826_v34 = vsel %vm2241_vm11, %v822_v4, 0.0 }
  0xae   : > { %v827_v13 = vsel %vm347_vm13, %v823_v47, 0.0  ;;  %v870_v38 = vadd.f32 %v826_v34, %v825_v6  ;;  %v828_v39 = vsel %vm348_vm14, %v824_v5, 0.0 }
  0xb0   : > { %v871_v17 = vadd.f32 %v870_v38, %v827_v13 }
  0xb2   : > { %v872_v54 = vadd.f32 %v871_v17, %v828_v39 }
  0xb4   : > { %878 = vst [vmem:[%s1993_s14 + $0x10] sm:$0xff] %v872_v54 }
  0xb5   : > { %1169 = shalt.err (!%p1166_p10)
}
  0xb6   : > { %s1170_s7 = scalar_lea.hbm %s2086_s30, 384  ;;  %s1174_s10 = scalar_lea.hbm %s2138_s3, 768 }
  0xb7   : > { %p1171_p13 = scmp.ne.s32.totalorder %s2086_s30, %s1170_s7  ;;  %p1175_p2 = scmp.lt.s32.totalorder %s2086_s30, %s2138_s3 }
  0xb8   : > { %p1176_p3 = scmp.lt.s32.totalorder %s1174_s10, %s1170_s7 }
  0xb9   : > { %p1172_p0 = pnand %p1171_p13, %p1320_p9 }
  0xba   : > { %p1177_p4 = por %p1176_p3, %p1175_p2 }
  0xbb   : > { %p1173_p1 = pneg %p1172_p0 }
  0xbd   : > { %p1178_p5 = pnand %p1177_p4, %p1173_p1 }
  0xbf   : > { %1181 = shalt.err (!%p1178_p5)
}
  0xc0   : > { %s1248_s13 = smov 128   ;;  %s1249_s14 = smov 8  }
  0xc1   : > { %1019 = dma.vmem_to_hbm [thread:$0]  (%p1320_p9), %s2081_s21, 384, %s2086_s30, %s880_s5, %s1248_s13, %s1248_s13, %s1249_s14  }
  0xc2 PF: > { %s910_s0 = sand.u32 1, %s1218_s15   ;;  %p1022_p6 = pnand %p1001_p12, %p1327_p11 }
  0xc3   : > { %s911_s23 = scalar_lea.sflag [#allocation6], %s910_s0 }
  0xc4   : > { %p1023_p7 = pneg %p1022_p6 }
  0xc6   : > { %1213 = dma.done.wait (%p1023_p7), %s911_s23, 384  }
  0xc7   : > { %1215 = vsyncadd (%p1023_p7), %s911_s23, 4294966912  ;;  %s23_s20 = sadd.s32 1, %s1238_s20   ;;  %s2242_s15 = smov %s1222_s16 }
  0xc8   : > { %p20_p8 = scmp.ge.s32.totalorder %s23_s20, 4   ;;  %s2243_s16 = smov %s1226_s17 }
  0xc9   : > { %s2244_s17 = smov %s1325_s27  ;;  %s2245_s18 = smov %s1234_s19 }
  0xca   : > { %s2246_s19 = smov %s2248_s22  ;;  %22 = sbr.rel (!%p20_p8) target bundleno = 11 (0xb), region = 85 }
  0xcf   :  { %916 = vsyncpa [#allocation5], 1 }
  0xd0   :  { %918 = vsyncpa [#allocation5 + $0x1], 1 }
  0xd1   :  { %919 = vsyncpa [#allocation6], 1 }
  0xd2   :  { %921 = vsyncpa [#allocation6 + $0x1], 1 }

</bundles_post_ra>
